<compile_context>
chip_gen: v7x
topology: tpu7x:2x2x1
jax: 0.10.0
libtpu: 0.0.40
codegen_flags: <defaults>
</compile_context>

<pallas_src>
import jax
import jax.numpy as jnp
from jax.experimental import pallas as pl
from jax.experimental.pallas import tpu as pltpu


# ---------------------------------------------------------------------------
# helpers
# ---------------------------------------------------------------------------
def _cdiv(a, b):
    return -(-a // b)


def _round_up(a, b):
    return _cdiv(a, b) * b


def _feature_pad(d):
    """Lane-dense (128) padding; round to the 256-wide native MXU tile of
    v6e/v7x when the dim is already larger than one 128-lane tile."""
    p = _round_up(d, 128)
    if p > 128:
        p = _round_up(d, 256)
    return p


def _vmem_capacity_bytes():
    """Per-core VMEM capacity; conservative 64 MiB (v7x) default if unknown."""
    cap = 64 << 20
    try:
        info = pltpu.get_tpu_info()
        cap = int(getattr(info, "vmem_capacity_bytes", cap) or cap)
    except Exception:
        pass
    return cap


# ---------------------------------------------------------------------------
# kernel
# ---------------------------------------------------------------------------
def ffn_kernel(x_ref, w1_ref, b1_ref, w2_ref, b2_ref, o_ref, acc_ref):
    # x_ref:  (tm, Hp)        input row tile (native/compute dtype)
    # w1_ref: (Hp, t_hid)     first-linear weight column block
    # b1_ref: (1, t_hid)      first-linear bias block (already f32)
    # w2_ref: (t_hid, Hp)     second-linear weight row block
    # b2_ref: (1, Hp)         second-linear bias (already f32)
    # o_ref:  (tm, Hp)        output tile
    # acc_ref:(tm, Hp) f32    accumulator over the Hid grid axis
    k = pl.program_id(1)

    @pl.when(k == 0)
    def _():
        acc_ref[...] = jnp.zeros_like(acc_ref)

    # mlp_1 for this Hid block on the MXU, f32 accumulation (no operand up-cast).
    h = jnp.dot(x_ref[...], w1_ref[...], preferred_element_type=jnp.float32)
    h = h + b1_ref[...]                      # bias already f32: no per-step convert

    # SiLU: sigmoid(x) * x, evaluated in f32 (EUP sigmoid).
    h = jax.nn.sigmoid(h) * h

    # dropout: identity (inference mode).  TODO(synk): training-mode mask.

    # mlp_2 partial product: feed the MXU in the weight dtype, accumulate f32.
    acc_ref[...] += jnp.dot(h.astype(w2_ref.dtype), w2_ref[...],
                            preferred_element_type=jnp.float32)

    @pl.when(k == pl.num_programs(1) - 1)
    def _():
        o_ref[...] = (acc_ref[...] + b2_ref[...]).astype(o_ref.dtype)


# ---------------------------------------------------------------------------
# one-time parameter preparation (hoisted out of the per-call hot path)
# ---------------------------------------------------------------------------
def prepare_ffn_params(w1, b1, w2, b2, *, compute_dtype=None):
    """Cast + pad parameters once.  w1: (H, Hid), b1: (Hid,), w2: (Hid, H),
    b2: (H,).  Set compute_dtype=jnp.bfloat16 for the bf16 MXU path."""
    H, Hid = w1.shape
    dtype = jnp.dtype(compute_dtype) if compute_dtype is not None else w1.dtype
    Hp, Hidp = _feature_pad(H), _feature_pad(Hid)

    w1p = w1.astype(dtype)
    w2p = w2.astype(dtype)
    if (Hp, Hidp) != (H, Hid):
        w1p = jnp.pad(w1p, ((0, Hp - H), (0, Hidp - Hid)))
        w2p = jnp.pad(w2p, ((0, Hidp - Hid), (0, Hp - H)))
    # Biases kept in f32 so the kernel adds them directly onto the f32 acc.
    b1p = jnp.pad(b1.astype(jnp.float32), ((0, Hidp - Hid),)).reshape(1, Hidp)
    b2p = jnp.pad(b2.astype(jnp.float32), ((0, Hp - H),)).reshape(1, Hp)

    return {"w1": w1p, "b1": b1p, "w2": w2p, "b2": b2p,
            "H": H, "Hid": Hid, "Hp": Hp, "Hidp": Hidp, "dtype": dtype}


# ---------------------------------------------------------------------------
# wrapper
# ---------------------------------------------------------------------------
def positionwise_ffn(x, params, *, tm=256, vmem_fraction=0.45):
    """x: (..., H); params: output of prepare_ffn_params.
    tm: row-tile target (use 128 on v5e if VMEM/spill-bound)."""
    H, Hp, Hidp = params["H"], params["Hp"], params["Hidp"]
    w1, b1, w2, b2 = params["w1"], params["b1"], params["w2"], params["b2"]
    dtype = params["dtype"]
    itemsize = jnp.dtype(dtype).itemsize

    orig_shape = x.shape
    orig_dtype = x.dtype
    x2d = x.reshape(-1, H)
    if x2d.dtype != dtype:
        x2d = x2d.astype(dtype)
    M = x2d.shape[0]

    vmem_cap = _vmem_capacity_bytes()
    sub = 16 if dtype == jnp.bfloat16 else 8

    # Row tile: MXU-friendly, but split M into >= 2 tiles whenever possible so
    # the "parallel" axis can shard across both TensorCores on v7x.
    tm_eff = max(sub, min(_round_up(tm, sub), _round_up(_cdiv(M, 2), sub)))

    # Pad M only to the sublane multiple; the edge row block may be partial.
    Mp = _round_up(M, sub)
    if Mp != M or Hp != H:
        x_p = jnp.pad(x2d, ((0, Mp - M), (0, Hp - H)))
    else:
        x_p = x2d
    grid_m = _cdiv(Mp, tm_eff)

    # --- choose the Hid block size t_hid from the VMEM budget ---------------
    def vmem_estimate(t_hid):
        acc = tm_eff * Hp * 4                       # f32 accumulator scratch
        xo = 4 * tm_eff * Hp * itemsize             # x + out, double-buffered
        w = 4 * Hp * t_hid * itemsize               # w1 + w2 blocks, 2x-buffered
        bias = 2 * (t_hid + Hp) * 4                 # f32 biases, 2x-buffered
        inter = tm_eff * t_hid * (4 + itemsize)     # h in f32 + cast copy
        return acc + xo + w + bias + inter

    fm = 256 if Hidp % 256 == 0 else 128            # Hid-block granularity
    budget = int(vmem_fraction * vmem_cap)
    t_hid = fm                                      # minimum fallback
    for n_k in range(1, Hidp // fm + 1):
        if Hidp % n_k:
            continue
        cand = Hidp // n_k
        if cand % fm:
            continue
        if vmem_estimate(cand) <= budget:
            t_hid = cand
            break
    grid_k = Hidp // t_hid

    est = vmem_estimate(t_hid)
    vmem_limit = int(min(max(2 * est, 32 << 20), int(0.9 * vmem_cap)))

    cost = pl.CostEstimate(
        flops=4 * grid_m * tm_eff * Hp * Hidp,
        transcendentals=grid_m * tm_eff * Hidp,
        bytes_accessed=int(2 * Mp * Hp * itemsize
                           + grid_m * (2 * Hp * Hidp * itemsize
                                       + (Hidp + Hp) * 4)),
    )

    in_specs = [
        pl.BlockSpec((tm_eff, Hp), lambda i, k: (i, 0)),   # x row tile
        pl.BlockSpec((Hp, t_hid), lambda i, k: (0, k)),    # w1 column block
        pl.BlockSpec((1, t_hid), lambda i, k: (0, k)),     # b1 block (f32)
        pl.BlockSpec((t_hid, Hp), lambda i, k: (k, 0)),    # w2 row block
        pl.BlockSpec((1, Hp), lambda i, k: (0, 0)),        # b2 (f32)
    ]
    out_specs = pl.BlockSpec((tm_eff, Hp), lambda i, k: (i, 0))

    out = pl.pallas_call(
        ffn_kernel,
        out_shape=jax.ShapeDtypeStruct((Mp, Hp), dtype),
        grid_spec=pltpu.PrefetchScalarGridSpec(
            num_scalar_prefetch=0,
            grid=(grid_m, grid_k),
            in_specs=in_specs,
            out_specs=out_specs,
            scratch_shapes=[pltpu.VMEM((tm_eff, Hp), jnp.float32)],
        ),
        compiler_params=pltpu.CompilerParams(
            dimension_semantics=("parallel", "arbitrary"),
            vmem_limit_bytes=vmem_limit,
        ),
        cost_estimate=cost,
    )(x_p, w1, b1, w2, b2)

    out = out[:M, :H].reshape(orig_shape[:-1] + (H,))
    if out.dtype != orig_dtype:
        out = out.astype(orig_dtype)
    return out


def reference_ffn(x, w1, b1, w2, b2):
    h = x @ w1 + b1
    h = jax.nn.sigmoid(h) * h
    return h @ w2 + b2


if __name__ == "__main__":
    # Small shapes consistent with the module: batch=2, seq=8, h_dim=32, rate=4
    B, S, H, RATE = 2, 8, 32, 4
    HID = H * RATE

    key = jax.random.PRNGKey(0)
    kx, kw1, kb1, kw2, kb2 = jax.random.split(key, 5)

    x = jax.random.normal(kx, (B, S, H), dtype=jnp.float32)

    # Deterministic parameter init (PyTorch-Linear-like uniform scaling),
    # stored pre-transposed as (in, out).
    lim1 = 1.0 / jnp.sqrt(H)
    lim2 = 1.0 / jnp.sqrt(HID)
    w1 = jax.random.uniform(kw1, (H, HID), minval=-lim1, maxval=lim1, dtype=jnp.float32)
    b1 = jax.random.uniform(kb1, (HID,), minval=-lim1, maxval=lim1, dtype=jnp.float32)
    w2 = jax.random.uniform(kw2, (HID, H), minval=-lim2, maxval=lim2, dtype=jnp.float32)
    b2 = jax.random.uniform(kb2, (H,), minval=-lim2, maxval=lim2, dtype=jnp.float32)

    # One-time parameter prep (cast + pad) hoisted out of the hot path.
    params = prepare_ffn_params(w1, b1, w2, b2)

    out = positionwise_ffn(x, params)
    out = jax.block_until_ready(out)

    ref = reference_ffn(x, w1, b1, w2, b2)
    assert out.shape == (B, S, H)
    assert jnp.allclose(out, ref, atol=1e-5, rtol=1e-5), "mismatch vs reference"

    print("KERNEL_OK")
</pallas_src>

<mosaic_0001>
module attributes {stable_mosaic.version = 11 : i64} {
  func.func @ffn_kernel(%arg0: i32, %arg1: i32, %arg2: memref<8x128xf32, #tpu.memory_space<vmem>>, %arg3: memref<128x128xf32, #tpu.memory_space<vmem>>, %arg4: memref<1x128xf32, #tpu.memory_space<vmem>>, %arg5: memref<128x128xf32, #tpu.memory_space<vmem>>, %arg6: memref<1x128xf32, #tpu.memory_space<vmem>>, %arg7: memref<8x128xf32, #tpu.memory_space<vmem>>, %arg8: memref<8x128xf32, #tpu.memory_space<vmem>>) attributes {dimension_semantics = [#tpu.dimension_semantics<parallel>, #tpu.dimension_semantics<arbitrary>], iteration_bounds = array<i64: 2, 1>, scalar_prefetch = 0 : i64, scratch_operands = 1 : i64, tpu.core_type = #tpu.core_type<tc>, window_params = [{transform_indices = @transform_0, window_bounds = array<i64: 8, 128>}, {transform_indices = @transform_1, window_bounds = array<i64: 128, 128>}, {transform_indices = @transform_2, window_bounds = array<i64: 1, 128>}, {transform_indices = @transform_3, window_bounds = array<i64: 128, 128>}, {pipeline_mode = #tpu.pipeline_mode<synchronous>, transform_indices = @transform_4, window_bounds = array<i64: 1, 128>}, {transform_indices = @transform_5, window_bounds = array<i64: 8, 128>}]} {
    %c0_i32 = arith.constant 0 : i32
    %0 = arith.cmpi eq, %arg1, %c0_i32 : i32
    %1 = arith.extui %0 : i1 to i32
    %c0_i32_0 = arith.constant 0 : i32
    %2 = arith.cmpi ne, %1, %c0_i32_0 : i32
    scf.if %2 {
      %cst_16 = arith.constant 0.000000e+00 : f32
      %23 = vector.broadcast %cst_16 : f32 to vector<8x128xf32>
      %c0_17 = arith.constant 0 : index
      %c0_18 = arith.constant 0 : index
      %24 = vector.load %arg8[%c0_17, %c0_18] : memref<8x128xf32, #tpu.memory_space<vmem>>, vector<8x128xf32>
      tpu.vector_store %arg8[%c0_17, %c0_18], %23 {strides = array<i32>} : memref<8x128xf32, #tpu.memory_space<vmem>>, vector<8x128xf32>,
    } else {
    }
    %c0 = arith.constant 0 : index
    %c0_1 = arith.constant 0 : index
    %3 = vector.load %arg2[%c0, %c0_1] : memref<8x128xf32, #tpu.memory_space<vmem>>, vector<8x128xf32>
    %c0_2 = arith.constant 0 : index
    %c0_3 = arith.constant 0 : index
    %4 = vector.load %arg3[%c0_2, %c0_3] : memref<128x128xf32, #tpu.memory_space<vmem>>, vector<128x128xf32>
    %cst = arith.constant dense<0.000000e+00> : vector<8x128xf32>
    %5 = tpu.matmul %3, %4, %cst {dimension_numbers = #tpu.dot_dimension_numbers<[1], [0], [0], [1], [0, 0, 1, 1], [], []>} : vector<8x128xf32>, vector<128x128xf32>, vector<8x128xf32> -> vector<8x128xf32>
    %c0_4 = arith.constant 0 : index
    %c0_5 = arith.constant 0 : index
    %6 = vector.load %arg4[%c0_4, %c0_5] : memref<1x128xf32, #tpu.memory_space<vmem>>, vector<1x128xf32>
    %7 = vector.broadcast %6 : vector<1x128xf32> to vector<8x128xf32>
    %8 = arith.addf %5, %7 : vector<8x128xf32>
    %9 = arith.negf %8 : vector<8x128xf32>
    %10 = math.exp %9 : vector<8x128xf32>
    %cst_6 = arith.constant 1.000000e+00 : f32
    %11 = vector.broadcast %cst_6 : f32 to vector<8x128xf32>
    %12 = arith.addf %11, %10 : vector<8x128xf32>
    %13 = arith.divf %11, %12 : vector<8x128xf32>
    %14 = arith.mulf %13, %8 : vector<8x128xf32>
    %c0_7 = arith.constant 0 : index
    %c0_8 = arith.constant 0 : index
    %15 = vector.load %arg8[%c0_7, %c0_8] : memref<8x128xf32, #tpu.memory_space<vmem>>, vector<8x128xf32>
    %c0_9 = arith.constant 0 : index
    %c0_10 = arith.constant 0 : index
    %16 = vector.load %arg5[%c0_9, %c0_10] : memref<128x128xf32, #tpu.memory_space<vmem>>, vector<128x128xf32>
    %cst_11 = arith.constant dense<0.000000e+00> : vector<8x128xf32>
    %17 = tpu.matmul %14, %16, %cst_11 {dimension_numbers = #tpu.dot_dimension_numbers<[1], [0], [0], [1], [0, 0, 1, 1], [], []>} : vector<8x128xf32>, vector<128x128xf32>, vector<8x128xf32> -> vector<8x128xf32>
    %18 = arith.addf %15, %17 : vector<8x128xf32>
    %c0_12 = arith.constant 0 : index
    %c0_13 = arith.constant 0 : index
    %19 = vector.load %arg8[%c0_12, %c0_13] : memref<8x128xf32, #tpu.memory_space<vmem>>, vector<8x128xf32>
    tpu.vector_store %arg8[%c0_12, %c0_13], %18 {strides = array<i32>} : memref<8x128xf32, #tpu.memory_space<vmem>>, vector<8x128xf32>,
    %c0_i32_14 = arith.constant 0 : i32
    %20 = arith.cmpi eq, %arg1, %c0_i32_14 : i32
    %21 = arith.extui %20 : i1 to i32
    %c0_i32_15 = arith.constant 0 : i32
    %22 = arith.cmpi ne, %21, %c0_i32_15 : i32
    scf.if %22 {
      %c0_16 = arith.constant 0 : index
      %c0_17 = arith.constant 0 : index
      %23 = vector.load %arg8[%c0_16, %c0_17] : memref<8x128xf32, #tpu.memory_space<vmem>>, vector<8x128xf32>
      %c0_18 = arith.constant 0 : index
      %c0_19 = arith.constant 0 : index
      %24 = vector.load %arg6[%c0_18, %c0_19] : memref<1x128xf32, #tpu.memory_space<vmem>>, vector<1x128xf32>
      %25 = vector.broadcast %24 : vector<1x128xf32> to vector<8x128xf32>
      %26 = arith.addf %23, %25 : vector<8x128xf32>
      %c0_20 = arith.constant 0 : index
      %c0_21 = arith.constant 0 : index
      %27 = vector.load %arg7[%c0_20, %c0_21] : memref<8x128xf32, #tpu.memory_space<vmem>>, vector<8x128xf32>
      tpu.vector_store %arg7[%c0_20, %c0_21], %26 {strides = array<i32>} : memref<8x128xf32, #tpu.memory_space<vmem>>, vector<8x128xf32>,
    } else {
    }
    return
  }
  func.func @transform_0(%arg0: i32, %arg1: i32) -> (i32, i32) {
    %c0_i32 = arith.constant 0 : i32
    %c0_i32_0 = arith.constant 0 : i32
    return %arg0, %c0_i32 : i32, i32
  }
  func.func @transform_1(%arg0: i32, %arg1: i32) -> (i32, i32) {
    %c0_i32 = arith.constant 0 : i32
    %c0_i32_0 = arith.constant 0 : i32
    return %c0_i32, %arg1 : i32, i32
  }
  func.func @transform_2(%arg0: i32, %arg1: i32) -> (i32, i32) {
    %c0_i32 = arith.constant 0 : i32
    %c0_i32_0 = arith.constant 0 : i32
    return %c0_i32, %arg1 : i32, i32
  }
  func.func @transform_3(%arg0: i32, %arg1: i32) -> (i32, i32) {
    %c0_i32 = arith.constant 0 : i32
    %c0_i32_0 = arith.constant 0 : i32
    return %arg1, %c0_i32 : i32, i32
  }
  func.func @transform_4(%arg0: i32, %arg1: i32) -> (i32, i32) {
    %c0_i32 = arith.constant 0 : i32
    %c0_i32_0 = arith.constant 0 : i32
    %c0_i32_1 = arith.constant 0 : i32
    return %c0_i32, %c0_i32_0 : i32, i32
  }
  func.func @transform_5(%arg0: i32, %arg1: i32) -> (i32, i32) {
    %c0_i32 = arith.constant 0 : i32
    %c0_i32_0 = arith.constant 0 : i32
    return %arg0, %c0_i32 : i32, i32
  }
}

</mosaic_0001>

<bundles_post_ra>
// kernel: tpu_custom_call.1
= control target key start
LH: loop header
LB: loop body
LE: loop exit
PB: predicated region body
PF: predicated region fallthrough
CT: control target
= control target key end

     0   :  { %10 = vsyncpa [#allocation4], 0  ;;  %s1403_s0 = inlined_call_operand.hbm [shape: f32[16,128], index: 0, kind: input, shape index: {}]   ;;  %s1404_s1 = inlined_call_operand.hbm [shape: f32[128,128], index: 1, kind: input, shape index: {}]   ;;  %s1405_s2 = inlined_call_operand.vmem [shape: f32[1,128], index: 2, kind: input, shape index: {}]   ;;  %s1406_s3 = inlined_call_operand.hbm [shape: f32[128,128], index: 3, kind: input, shape index: {}]   ;;  %s1407_s4 = inlined_call_operand.vmem [shape: f32[1,128], index: 4, kind: input, shape index: {}]   ;;  %s1408_s5 = inlined_call_operand.hbm [shape: f32[16,128], index: 5, kind: output, shape index: {}]  }
   0x1   :  { %12 = vsyncpa [#allocation4 + $0x1], 0 }
   0x2   :  { %13 = vsyncpa [#allocation7], 0 }
   0x3   :  { %14 = vsyncpa [#allocation5], 0 }
   0x4   :  { %16 = vsyncpa [#allocation5 + $0x1], 0  ;;  %s1124_s18 = smov 0   ;;  %s1126_s19 = smov 0  }
   0x5   :  { %s1128_s20 = smov 0   ;;  %s1130_s21 = smov 0  }
   0x6   :  { %s1132_s22 = smov 0   ;;  %s1134_s23 = smov 0  }
   0x7 LB: > { %s646_s24 = sadd.s32 4294967295, %s1083_s23   ;;  %s647_s25 = sadd.s32 4294967294, %s1083_s23   ;;  %s1083_s23 = sphi %s1134_s23, %s22_s23   ;;  %s1079_s22 = sphi %s1132_s22, %s1430_s22   ;;  %s1075_s21 = sphi %s1130_s21, %s1429_s21   ;;  %s1071_s20 = sphi %s1128_s20, %s1428_s20   ;;  %s1067_s19 = sphi %s1126_s19, %s1427_s19   ;;  %s1063_s18 = sphi %s1124_s18, %s1426_s18  }
   0x8   : > { %p54_p0 = scmp.ne.s32.totalorder %s1067_s19, %s1063_s18  ;;  %p1158_p1 = scmp.eq.s32.totalorder %s646_s24, 0 }
   0x9   : > { %p1162_p2 = scmp.eq.s32.totalorder %s646_s24, 1  ;;  %p183_p3 = scmp.eq.s32.totalorder %s647_s25, 1 }
   0xa   : > { %s1413_s26 = scalar_select %p1158_p1, 1, 0 }
   0xb   : > { %p1168_p4 = por %p1158_p1, %p54_p0  ;;  %p648_p5 = scmp.ge.s32.totalorder %s1083_s23, 1 }
   0xc   : > { %p1173_p6 = por %p183_p3, %p54_p0  ;;  %p190_p7 = scmp.lt.s32.totalorder %s1083_s23, 3 }
   0xd   : > { %s1415_s28 = scalar_select %p1168_p4, 1, 0 }
   0xe   : > { %s1416_s29 = scalar_select %p1173_p6, 1, 0 }
   0xf   : > { %p1178_p8 = pnand %p648_p5, %p190_p7  ;;  %s1085_s6 = smov [#allocation6]  }
  0x10   : > { %s204_s7 = sshll.u32 %s1085_s6, 4  ;;  %s1086_s9 = smov [#allocation8]   ;;  %s1182_s7 = int_to_ptr.vmem [resolvable:$true] %s204_s7 }
  0x11   : > { %p831_p9 = pneg %p1178_p8  ;;  %s226_s10 = sshll.u32 %s1086_s9, 4  ;;  %s1193_s10 = int_to_ptr.vmem [resolvable:$true] %s226_s10 }
  0x12   : > { %s911_s13 = scalar_lea.hbm %s1404_s1, 2048 }
  0x13   : > { %p1189_p11 = pnand %p831_p9, %p1158_p1  ;;  %p912_p12 = scmp.ne.s32.totalorder %s1404_s1, %s911_s13 }
  0x14   : > { %p918_p5 = scmp.lt.u32.totalorder %s911_s13, %s1404_s1 }
  0x15   : > { %p913_p13 = pneg %p1189_p11 }
  0x17   : > { %p914_p0 = pnand %p913_p13, %p912_p12 }
  0x19   : > { %p915_p3 = pneg %p914_p0 }
  0x1b   : > { %p920_p7 = pnand %p918_p5, %p915_p3 }
  0x1d   : > { %923 = shalt.err (!%p920_p7)
}
  0x1e   : > { %s924_s24 = scalar_lea.vmem %s1182_s7, 2048  ;;  %p932_p1 = scmp.lt.s32.totalorder %s1182_s7, %s1182_s7 }
  0x1f   : > { %p925_p9 = scmp.ne.s32.totalorder %s1182_s7, %s924_s24  ;;  %p933_p12 = scmp.lt.s32.totalorder %s924_s24, %s924_s24 }
  0x21   : > { %p927_p10 = pnand %p925_p9, %p913_p13  ;;  %p934_p0 = por %p933_p12, %p932_p1 }
  0x23   : > { %p928_p6 = pneg %p927_p10 }
  0x25   : > { %p935_p4 = pnand %p934_p0, %p928_p6 }
  0x27   : > { %938 = shalt.err (!%p935_p4)
}
  0x28   : > { %s1087_s25 = smov 128   ;;  %s1088_s6 = smov 8  }
  0x29   : > { %834 = dma.hbm_to_vmem [thread:$0]  (!%p1189_p11), %s1404_s1, 2048, %s1182_s7, [#allocation7], %s1087_s25, %s1087_s25, %s1088_s6  }
  0x2a   : > { %s939_s14 = scalar_lea.hbm %s1406_s3, 2048 }
  0x2b   : > { %p940_p1 = scmp.ne.s32.totalorder %s1406_s3, %s939_s14  ;;  %p946_p10 = scmp.lt.u32.totalorder %s939_s14, %s1406_s3 }
  0x2d   : > { %p942_p4 = pnand %p940_p1, %p913_p13 }
  0x2f   : > { %p943_p6 = pneg %p942_p4 }
  0x31   : > { %p948_p3 = pnand %p946_p10, %p943_p6 }
  0x33   : > { %951 = shalt.err (!%p948_p3)
}
  0x34   : > { %s952_s7 = scalar_lea.vmem %s1193_s10, 2048  ;;  %p960_p12 = scmp.lt.s32.totalorder %s1193_s10, %s1193_s10 }
  0x35   : > { %p953_p5 = scmp.ne.s32.totalorder %s1193_s10, %s952_s7  ;;  %p961_p0 = scmp.lt.s32.totalorder %s952_s7, %s952_s7 }
  0x37   : > { %p955_p7 = pnand %p953_p5, %p913_p13  ;;  %p962_p1 = por %p961_p0, %p960_p12 }
  0x39   : > { %p956_p9 = pneg %p955_p7 }
  0x3b   : > { %p963_p4 = pnand %p962_p1, %p956_p9 }
  0x3d   : > { %966 = shalt.err (!%p963_p4)
}
  0x3e   : > { %837 = dma.hbm_to_vmem [thread:$0]  (!%p1189_p11), %s1406_s3, 2048, %s1193_s10, [#allocation7], %s1087_s25, %s1087_s25, %s1088_s6  }
  0x3f   : > { %s34_s12 = sadd.s32 1, %s1079_s22  ;;  %s41_s13 = sadd.s32 1, %s1071_s20 }
  0x40   : > { %p36_p13 = scmp.ge.s32.totalorder %s34_s12, 2  ;;  %p48_p6 = scmp.ne.s32.totalorder %s1071_s20, %s1067_s19 }
  0x41   : > { %p49_p10 = scmp.eq.s32.totalorder %s1083_s23, 0  ;;  %p848_p3 = scmp.lt.s32.totalorder %s1083_s23, 2 }
  0x42   : > { %s1432_s12 = smov (%p36_p13, %s34_s12), 0  ;;  %p1257_p7 = por %p1162_p2, %p48_p6 }
  0x43   : > { %p50_p5 = por %p49_p10, %p48_p6  ;;  %s38_s14 = ssub.s32 %s1079_s22, %s1432_s12 }
  0x44   : > { %s1419_s8 = scalar_select %p1257_p7, 1, 0 }
  0x45   : > { %s243_s15 = sand.u32 1, %s1071_s20   ;;  %p39_p9 = scmp.eq.s32.totalorder %s38_s14, 0 }
  0x46   : > { %s653_s10 = sshll.u32 %s243_s15, 3  ;;  %s654_s25 = sshll.u32 %s1079_s22, 7 }
  0x47   : > { %s1266_s6 = scalar_select %p39_p9, %s1071_s20, %s41_s13  }
  0x48   : > { %s1271_s24 = scalar_lea.hbm %s1403_s0, %s654_s25  ;;  %s247_s27 = scalar_lea.vmem [#allocation3], %s653_s10 }
  0x49   : > { %s254_s7 = sshll.u32 %s247_s27, 4  ;;  %p1275_p2 = pnand %p848_p3, %p50_p5  ;;  %s1279_s7 = int_to_ptr.vmem [resolvable:$true] %s254_s7 }
  0x4a   : > { %s244_s11 = scalar_lea.sflag [#allocation4], %s243_s15  ;;  %s967_s13 = scalar_lea.hbm %s1271_s24, 128 }
  0x4b   : > { %p968_p11 = scmp.ne.s32.totalorder %s1271_s24, %s967_s13  ;;  %p969_p12 = pneg %p1275_p2 }
  0x4c   : > { %s972_s25 = scalar_lea.hbm %s1403_s0, 256  ;;  %p973_p4 = scmp.lt.u32.totalorder %s1271_s24, %s1403_s0 }
  0x4d   : > { %p970_p0 = pnand %p969_p12, %p968_p11  ;;  %p974_p13 = scmp.lt.u32.totalorder %s972_s25, %s967_s13 }
  0x4e   : > { %p976_p10 = scmp.lt.u32.totalorder %s967_s13, %s1271_s24 }
  0x4f   : > { %p971_p1 = pneg %p970_p0  ;;  %p975_p6 = por %p974_p13, %p973_p4 }
  0x51   : > { %p977_p3 = por %p976_p10, %p975_p6 }
  0x53   : > { %p978_p5 = pnand %p977_p3, %p971_p1 }
  0x55   : > { %981 = shalt.err (!%p978_p5)
}
  0x56   : > { %s982_s15 = scalar_lea.vmem %s1279_s7, 128  ;;  %s1089_s27 = smov [#allocation3]  }
  0x57   : > { %p983_p9 = scmp.ne.s32.totalorder %s1279_s7, %s982_s15  ;;  %s987_s14 = sshll.u32 %s1089_s27, 4  ;;  %s988_s14 = int_to_ptr.vmem [resolvable:$false] %s987_s14 }
  0x58   : > { %s989_s10 = scalar_lea.vmem %s988_s14, 256  ;;  %p990_p7 = scmp.lt.s32.totalorder %s1279_s7, %s988_s14 }
  0x59   : > { %p985_p11 = pnand %p983_p9, %p969_p12  ;;  %p991_p4 = scmp.lt.s32.totalorder %s989_s10, %s982_s15 }
  0x5b   : > { %p986_p0 = pneg %p985_p11  ;;  %p992_p13 = por %p991_p4, %p990_p7 }
  0x5d   : > { %p993_p6 = pnand %p992_p13, %p986_p0 }
  0x5f   : > { %996 = shalt.err (!%p993_p6)
}
  0x60   : > { %841 = dma.hbm_to_vmem [thread:$0]  (!%p1275_p2), %s1271_s24, 128, %s1279_s7, %s244_s11  }
  0x61   : > { %263 = sbr.rel (%p1178_p8) target bundleno = 613 (0x265), region = 40  ;;  %s1309_s13 = sand.u32 (!%p1178_p8), 1, %s1067_s19  }
  0x62   : > { %s656_s25 = sshll.u32 (!%p1178_p8), %s1309_s13, 3  ;;  %s266_s16 = scalar_lea.sflag (!%p1178_p8), [#allocation4], %s1309_s13 }
  0x63   : > { %s1315_s17 = scalar_lea.vmem (!%p1178_p8), [#allocation3], %s656_s25  ;;  %p1421_p7 = scmp.ne.s32.totalorder (!%p1178_p8), %s1415_s28, 0 }
  0x68   : > { %1050 = dma.done.wait (%p1421_p7), %s266_s16, 128  }
  0x69   : > { %1052 = vsyncadd (%p1421_p7), %s266_s16, 4294967168  ;;  %p1422_p2 = scmp.ne.s32.totalorder %s1413_s26, 0 }
  0x6b   : > { %1054 = dma.done.wait (%p1422_p2), [#allocation7], 4096  }
  0x6c   : > { %1056 = vsyncadd (%p1422_p2), [#allocation7], 4294963200  ;;  %v1090_v0 = vmov 0.0|0.0   ;;  %vm1091_vm0 = vmmov 0   ;;  %v1092_v1 = vmov 0.0   ;;  %v317_v2 = vld [vmem:[#allocation6] sm:$0xff] }
  0x6d   : > { %771 = vmatprep.subr.bf16.mxu0 %v1090_v0  ;;  %733 = vmatprep.mubr.msk.f32.mxu0 %vm1091_vm0, %v1092_v1  ;;  %v318_v3 = vld [vmem:[#allocation6 + $0x8] sm:$0xff]  ;;  %v319_v4 = vld [vmem:[#allocation6 + $0x10] sm:$0xff]  ;;  %v320_v6 = vld [vmem:[#allocation6 + $0x18] sm:$0xff]  ;;  %s664_s7 = sshll.u32 %s1075_s21, 7  ;;  %s306_s9 = scalar_lea.vmem [#allocation9], %s656_s25 }
  0x6e   : > { %795 = vmatprep.subr.bf16.mxu1 %v1090_v0  ;;  %768 = vmatprep.mubr.msk.f32.mxu1 %vm1091_vm0, %v1092_v1  ;;  %v772_v5 = vpack.c.bf16 %v318_v3, %v317_v2  ;;  %v775_v7 = vpack.c.bf16 %v320_v6, %v319_v4  ;;  %v321_v8 = vld [vmem:[#allocation6 + $0x20] sm:$0xff]  ;;  %v322_v9 = vld [vmem:[#allocation6 + $0x28] sm:$0xff]  ;;  %v323_v11 = vld [vmem:[#allocation6 + $0x30] sm:$0xff]  ;;  %s533_s11 = sshll.u32 %s306_s9, 4  ;;  %s1354_s14 = scalar_lea.hbm %s1408_s5, %s664_s7  ;;  %s1356_s11 = int_to_ptr.vmem [resolvable:$true] %s533_s11 }
  0x6f   : > { %v778_v10 = vpack.c.bf16 %v322_v9, %v321_v8  ;;  %v324_v12 = vld [vmem:[#allocation6 + $0x38] sm:$0xff]  ;;  %v325_v14 = vld [vmem:[#allocation6 + $0x40] sm:$0xff]  ;;  %v326_v15 = vld [vmem:[#allocation6 + $0x48] sm:$0xff]  ;;  %s520_s10 = scalar_lea.sflag [#allocation5], %s1309_s13  ;;  %s997_s16 = scalar_lea.vmem %s1356_s11, 128 }
  0x70   : > { %773 = vmatpush3.bf16.msra.mxu0 %v772_v5  ;;  %v781_v13 = vpack.c.bf16 %v324_v12, %v323_v11  ;;  %v784_v16 = vpack.c.bf16 %v326_v15, %v325_v14  ;;  %v327_v17 = vld [vmem:[#allocation6 + $0x50] sm:$0xff]  ;;  %v328_v18 = vld [vmem:[#allocation6 + $0x58] sm:$0xff]  ;;  %v329_v20 = vld [vmem:[#allocation6 + $0x60] sm:$0xff]  ;;  %p998_p8 = scmp.ne.s32.totalorder %s1356_s11, %s997_s16  ;;  %p1423_p12 = scmp.ne.s32.totalorder %s1419_s8, 0 }
  0x71   : > { %774 = vmatprep.subr.bf16.mxu0 %v1090_v0  ;;  %v787_v19 = vpack.c.bf16 %v328_v18, %v327_v17  ;;  %v330_v21 = vld [vmem:[#allocation6 + $0x68] sm:$0xff]  ;;  %v331_v23 = vld [vmem:[#allocation6 + $0x70] sm:$0xff]  ;;  %v332_v24 = vld [vmem:[#allocation6 + $0x78] sm:$0xff]  ;;  %s1093_s21 = smov [#allocation9]  }
  0x72   : > { %v790_v22 = vpack.c.bf16 %v330_v21, %v329_v20  ;;  %v793_v25 = vpack.c.bf16 %v332_v24, %v331_v23  ;;  %v316_v26 = vld [vmem:[%s1315_s17] sm:$0xff]  ;;  %v418_v27 = vld [vmem:[#allocation8] sm:$0xff]  ;;  %v419_v28 = vld [vmem:[#allocation8 + $0x8] sm:$0xff]  ;;  %p999_p1 = pnand %p998_p8, %p1423_p12  ;;  %s1001_s25 = sshll.u32 %s1093_s21, 4  ;;  %s1002_s25 = int_to_ptr.vmem [resolvable:$false] %s1001_s25 }
  0x73   : > { %v796_v29 = vpack.c.bf16 %v419_v28, %v418_v27  ;;  %v420_v30 = vld [vmem:[#allocation8 + $0x10] sm:$0xff]  ;;  %v421_v31 = vld [vmem:[#allocation8 + $0x18] sm:$0xff]  ;;  %v422_v33 = vld [vmem:[#allocation8 + $0x20] sm:$0xff]  ;;  %s1003_s17 = scalar_lea.vmem %s1002_s25, 256  ;;  %p1004_p3 = scmp.lt.s32.totalorder %s1356_s11, %s1002_s25 }
  0x74   : > { %776 = vmatpush3.bf16.msra.mxu0 %v775_v7  ;;  %v799_v32 = vpack.c.bf16 %v421_v31, %v420_v30  ;;  %v423_v34 = vld [vmem:[#allocation8 + $0x28] sm:$0xff]  ;;  %v424_v36 = vld [vmem:[#allocation8 + $0x30] sm:$0xff]  ;;  %v425_v37 = vld [vmem:[#allocation8 + $0x38] sm:$0xff]  ;;  %p1000_p10 = pneg %p999_p1  ;;  %p1005_p5 = scmp.lt.s32.totalorder %s1003_s17, %s997_s16 }
  0x75   : > { %777 = vmatprep.subr.bf16.mxu0 %v1090_v0  ;;  %797 = vmatpush3.bf16.msra.mxu1 %v796_v29  ;;  %v802_v35 = vpack.c.bf16 %v423_v34, %v422_v33  ;;  %v805_v38 = vpack.c.bf16 %v425_v37, %v424_v36  ;;  %v426_v39 = vld [vmem:[#allocation8 + $0x40] sm:$0xff]  ;;  %v427_v40 = vld [vmem:[#allocation8 + $0x48] sm:$0xff]  ;;  %v428_v42 = vld [vmem:[#allocation8 + $0x50] sm:$0xff] }
  0x76   : > { %798 = vmatprep.subr.bf16.mxu1 %v1090_v0  ;;  %v808_v41 = vpack.c.bf16 %v427_v40, %v426_v39  ;;  %v429_v43 = vld [vmem:[#allocation8 + $0x58] sm:$0xff]  ;;  %v430_v45 = vld [vmem:[#allocation8 + $0x60] sm:$0xff]  ;;  %v431_v46 = vld [vmem:[#allocation8 + $0x68] sm:$0xff]  ;;  %p1006_p9 = por %p1005_p5, %p1004_p3 }
  0x77   : > { %v811_v44 = vpack.c.bf16 %v429_v43, %v428_v42  ;;  %v814_v47 = vpack.c.bf16 %v431_v46, %v430_v45  ;;  %v432_v48 = vld [vmem:[#allocation8 + $0x70] sm:$0xff]  ;;  %v433_v49 = vld [vmem:[#allocation8 + $0x78] sm:$0xff] }
  0x78   : > { %779 = vmatpush3.bf16.msra.mxu0 %v778_v10  ;;  %v817_v50 = vpack.c.bf16 %v433_v49, %v432_v48  ;;  %v660_v51 = vld [vmem:[%s1405_s2] ss:$0 sm:$0xff]  ;;  %p1007_p11 = pnand %p1006_p9, %p1000_p10 }
  0x79   : > { %780 = vmatprep.subr.bf16.mxu0 %v1090_v0  ;;  %800 = vmatpush3.bf16.msra.mxu1 %v799_v32  ;;  %v662_v60 = vld [vmem:[%s1407_s4] ss:$0 sm:$0xff] }
  0x7a   : > { %801 = vmatprep.subr.bf16.mxu1 %v1090_v0 }
  0x7c   : > { %782 = vmatpush3.bf16.msra.mxu0 %v781_v13 }
  0x7d   : > { %783 = vmatprep.subr.bf16.mxu0 %v1090_v0  ;;  %803 = vmatpush3.bf16.msra.mxu1 %v802_v35 }
  0x7e   : > { %804 = vmatprep.subr.bf16.mxu1 %v1090_v0 }
  0x80   : > { %785 = vmatpush3.bf16.msra.mxu0 %v784_v16 }
  0x81   : > { %786 = vmatprep.subr.bf16.mxu0 %v1090_v0  ;;  %806 = vmatpush3.bf16.msra.mxu1 %v805_v38 }
  0x82   : > { %807 = vmatprep.subr.bf16.mxu1 %v1090_v0 }
  0x84   : > { %788 = vmatpush3.bf16.msra.mxu0 %v787_v19 }
  0x85   : > { %789 = vmatprep.subr.bf16.mxu0 %v1090_v0  ;;  %809 = vmatpush3.bf16.msra.mxu1 %v808_v41 }
  0x86   : > { %810 = vmatprep.subr.bf16.mxu1 %v1090_v0 }
  0x88   : > { %791 = vmatpush3.bf16.msra.mxu0 %v790_v22 }
  0x89   : > { %792 = vmatprep.subr.bf16.mxu0 %v1090_v0  ;;  %812 = vmatpush3.bf16.msra.mxu1 %v811_v44 }
  0x8a   : > { %813 = vmatprep.subr.bf16.mxu1 %v1090_v0 }
  0x8c   : > { %794 = vmatpush3.bf16.msra.mxu0 %v793_v25 }
  0x8d   : > { %815 = vmatpush3.bf16.msra.mxu1 %v814_v47 }
  0x8e   : > { %816 = vmatprep.subr.bf16.mxu1 %v1090_v0 }
  0x8f   : > { %734 = vmatmul.mubr.f32.vlgmr.msra.gmra.mrb[0].mxu0 %v316_v26 }
  0x91   : > { %818 = vmatpush3.bf16.msra.mxu1 %v817_v50 }
 0x162   : > { %v406_v52 = vpop.f32.mrb[0].mxu0 }
 0x163   : > { %v407_v53 = vadd.f32 %v660_v51, %v406_v52  ;;  %v735_v54 = vpop.f32.mrb[1].mxu0 }
 0x165   : > { %v661_v55 = vmul.f32 -1.442695, %v407_v53 }
 0x167   : > { %907 = vpow2.f32 %v661_v55 }
 0x171   : > { %v908_v56 = vpop.eup %907 }
 0x172   : > { %v413_v57 = vadd.f32 1.0, %v908_v56 }
 0x174   : > { %909 = vrcp.f32 %v413_v57 }
 0x17e   : > { %v910_v58 = vpop.eup %909 }
 0x17f   : > { %v416_v59 = vmul.f32 %v910_v58, %v407_v53 }
 0x181   : > { %769 = vmatmul.mubr.f32.vlgmr.msra.gmra.mrb[0].mxu1 %v416_v59 }
 0x254   : > { %v500_v61 = vpop.f32.mrb[0].mxu1 }
 0x255   : > { %v517_v62 = vadd.f32 %v662_v60, %v500_v61  ;;  %v770_v63 = vpop.f32.mrb[1].mxu1 }
 0x257   : > { %518 = vst [vmem:[%s306_s9] sm:$0xff] %v517_v62 }
 0x258   : > { %1010 = shalt.err (!%p1007_p11)
}
 0x259   : > { %s1011_s13 = scalar_lea.hbm %s1354_s14, 128  ;;  %s1015_s30 = scalar_lea.hbm %s1408_s5, 256 }
 0x25a   : > { %p1012_p0 = scmp.ne.s32.totalorder %s1354_s14, %s1011_s13  ;;  %p1016_p6 = scmp.lt.u32.totalorder %s1354_s14, %s1408_s5 }
 0x25b   : > { %p1017_p7 = scmp.lt.u32.totalorder %s1015_s30, %s1011_s13  ;;  %p1019_p8 = scmp.lt.u32.totalorder %s1011_s13, %s1354_s14 }
 0x25c   : > { %p1013_p4 = pnand %p1012_p0, %p1423_p12 }
 0x25d   : > { %p1018_p2 = por %p1017_p7, %p1016_p6 }
 0x25e   : > { %p1014_p13 = pneg %p1013_p4 }
 0x25f   : > { %p1020_p1 = por %p1019_p8, %p1018_p2 }
 0x261   : > { %p1021_p10 = pnand %p1020_p1, %p1014_p13 }
 0x263   : > { %1024 = shalt.err (!%p1021_p10)
}
 0x264   : > { %829 = dma.vmem_to_hbm [thread:$0]  (%p1423_p12), %s1356_s11, 128, %s1354_s14, %s520_s10  }
 0x265 PF: > { %s545_s9 = sand.u32 1, %s1063_s18   ;;  %p1424_p3 = scmp.ne.s32.totalorder %s1416_s29, 0 }
 0x266   : > { %p1425_p5 = scmp.ge.s32.totalorder %s1083_s23, 2  ;;  %s546_s15 = scalar_lea.sflag [#allocation5], %s545_s9 }
 0x268   : > { %p843_p9 = pnand %p1425_p5, %p1424_p3 }
 0x26a   : > { %1058 = dma.done.wait (!%p843_p9), %s546_s15, 128  }
 0x26b   : > { %1060 = vsyncadd (!%p843_p9), %s546_s15, 4294967168  ;;  %s22_s23 = sadd.s32 1, %s1083_s23   ;;  %s1426_s18 = smov %s1067_s19 }
 0x26c   : > { %p19_p11 = scmp.ge.s32.totalorder %s22_s23, 4   ;;  %s1427_s19 = smov %s1071_s20 }
 0x26d   : > { %s1428_s20 = smov %s1266_s6  ;;  %s1429_s21 = smov %s1079_s22 }
 0x26e   : > { %s1430_s22 = smov %s1432_s12  ;;  %21 = sbr.rel (!%p19_p11) target bundleno = 7 (0x7), region = 106 }
 0x275   :  { %551 = vsyncpa [#allocation4], 1 }
 0x276   :  { %553 = vsyncpa [#allocation4 + $0x1], 1 }
 0x277   :  { %554 = vsyncpa [#allocation7], 1 }
 0x278   :  { %555 = vsyncpa [#allocation5], 1 }
 0x279   :  { %557 = vsyncpa [#allocation5 + $0x1], 1 }

</bundles_post_ra>
